<compile_context>
chip_gen: v7x
topology: tpu7x:2x2x1
jax: 0.10.0
libtpu: 0.0.40
codegen_flags: <defaults>
</compile_context>

<pallas_src>
import jax
import jax.numpy as jnp
import numpy as np
from jax.experimental import pallas as pl
from jax.experimental.pallas import tpu as pltpu

HIDDEN = 64        # fc1 output features
OUT = 2            # fc2 output features (softmax classes)
HIDDEN_PAD = 128   # lane-dense hidden width inside the kernel (zero-padded)


# ---- Pallas kernel -----------------------------------------------------------
def weight_network_kernel(x_ref, w1_ref, b1_ref, w2d_ref, b2d_ref, o_ref):
    # fc1 + relu: one (tm, D) x (D, 128) MXU matmul, f32 accumulation.
    h = jnp.maximum(
        jnp.dot(x_ref[...], w1_ref[...], preferred_element_type=jnp.float32)
        + b1_ref[...], 0.0)                                   # (tm, 128), f32

    # fc2 folded to a single logit difference d = z0 - z1 (padded hidden lanes
    # of w2d are zero, so they contribute nothing).  VPU mul + XLU lane-reduce.
    d = jnp.sum(h * w2d_ref[...], axis=-1, keepdims=True) + b2d_ref[...]  # (tm, 1)

    # softmax over 2 classes == [sigmoid(d), sigmoid(-d)] (numerically stable:
    # exp overflow -> inf -> prob 0 / 1).
    col = jax.lax.broadcasted_iota(jnp.int32, o_ref.shape, 1)            # (tm, 2)
    neg = jnp.where(col == 0, -1.0, 1.0)      # class 0 -> exp(-d), class 1 -> exp(+d)
    p = 1.0 / (1.0 + jnp.exp(d * neg))
    o_ref[...] = p.astype(o_ref.dtype)


# ---- Wrapper -----------------------------------------------------------------
def _round_up(n, m):
    return ((n + m - 1) // m) * m


def weight_network_forward(params, rnn_output, *, tm=1024):
    """softmax(fc2(relu(fc1(rnn_output))), dim=-1). Accepts any leading dims."""
    orig_shape = rnn_output.shape
    D = orig_shape[-1]
    x = rnn_output.reshape(-1, D)            # native dtype: no f32 upcast, no pad
    N = x.shape[0]
    if N == 0:
        return jnp.zeros((*orig_shape[:-1], OUT), rnn_output.dtype)

    dtype = x.dtype
    itemsize = jnp.dtype(dtype).itemsize

    # --- row-tile selection (multiple of 8 always) ---
    tm = max(8, min(tm, _round_up(N, 8)))
    # v7x: prefer >= 2 grid steps so the "parallel" axis shards across both TCs.
    if pl.cdiv(N, tm) < 2 and N > 8:
        tm = min(tm, max(8, _round_up(pl.cdiv(N, 2), 8)))
    # Keep double-buffered x + out tiles well inside the scoped-VMEM default
    # (v7x: 32 MiB of 64 MiB physical); only matters for very large D.
    vmem_budget = 24 << 20
    max_tm = max(8, (vmem_budget // (2 * (D * itemsize + OUT * 4))) // 8 * 8)
    tm = min(tm, max_tm)

    grid = (pl.cdiv(N, tm),)

    # Weights prepared once: lane-dense zero-padded fc1; fc2 folded to a logit
    # difference (vector + scalar).  w1 matches the activation dtype so bf16
    # inputs run the MXU at full rate; post-matmul math stays f32.
    w1p = jnp.pad(params["w1"].astype(dtype),
                  ((0, 0), (0, HIDDEN_PAD - HIDDEN)))
    b1p = jnp.pad(params["b1"].astype(jnp.float32).reshape(1, -1),
                  ((0, 0), (0, HIDDEN_PAD - HIDDEN)))
    w2d = (params["w2"][:, 0] - params["w2"][:, 1]).astype(jnp.float32).reshape(1, -1)
    w2dp = jnp.pad(w2d, ((0, 0), (0, HIDDEN_PAD - HIDDEN)))
    b2d = (params["b2"][0] - params["b2"][1]).astype(jnp.float32).reshape(1, 1)

    # TODO(synk): for tiny N (< ~512 rows) a plain fused-XLA path would avoid
    # kernel-launch overhead entirely; kept on the Pallas path here so the
    # kernel is always exercised.
    out = pl.pallas_call(
        weight_network_kernel,
        out_shape=jax.ShapeDtypeStruct((N, OUT), jnp.float32),
        grid_spec=pltpu.PrefetchScalarGridSpec(
            num_scalar_prefetch=0,
            grid=grid,
            in_specs=[
                pl.BlockSpec((tm, D), lambda i: (i, 0)),           # x row tile
                pl.BlockSpec((D, HIDDEN_PAD), lambda i: (0, 0)),   # w1 (resident)
                pl.BlockSpec((1, HIDDEN_PAD), lambda i: (0, 0)),   # b1
                pl.BlockSpec((1, HIDDEN_PAD), lambda i: (0, 0)),   # w2[:,0]-w2[:,1]
                pl.BlockSpec((1, 1), lambda i: (0, 0)),            # b2[0]-b2[1]
            ],
            out_specs=pl.BlockSpec((tm, OUT), lambda i: (i, 0)),   # compact (N,2)
        ),
        compiler_params=pltpu.CompilerParams(
            dimension_semantics=("parallel",)),   # rows are independent
        cost_estimate=pl.CostEstimate(
            flops=2 * N * D * HIDDEN + 4 * N * HIDDEN,
            transcendentals=2 * N,
            bytes_accessed=N * D * itemsize + N * OUT * 4
                           + D * HIDDEN_PAD * itemsize),
    )(x, w1p, b1p, w2dp, b2d)

    return out.reshape(*orig_shape[:-1], OUT).astype(rnn_output.dtype)


# ---- Parameter init (deterministic, nn.Linear-style uniform) ------------------
def init_params(key, input_dim):
    k1, k2, k3, k4 = jax.random.split(key, 4)
    lim1 = 1.0 / np.sqrt(input_dim)
    lim2 = 1.0 / np.sqrt(HIDDEN)
    return {
        # stored already transposed to [in, out]
        "w1": jax.random.uniform(k1, (input_dim, HIDDEN), jnp.float32, -lim1, lim1),
        "b1": jax.random.uniform(k2, (HIDDEN,), jnp.float32, -lim1, lim1),
        "w2": jax.random.uniform(k3, (HIDDEN, OUT), jnp.float32, -lim2, lim2),
        "b2": jax.random.uniform(k4, (OUT,), jnp.float32, -lim2, lim2),
    }


# ---- Pure-JAX reference (correctness check) -----------------------------------
def reference_forward(params, rnn_output):
    x = jax.nn.relu(rnn_output @ params["w1"] + params["b1"])
    z = x @ params["w2"] + params["b2"]
    return jax.nn.softmax(z, axis=-1)


if __name__ == "__main__":
    key = jax.random.PRNGKey(0)
    pkey, xkey = jax.random.split(key)

    INPUT_DIM = 64               # dim of the RNN output feeding this head
    SEQ, BATCH = 8, 4            # small example shapes
    params = init_params(pkey, INPUT_DIM)
    rnn_output = jax.random.normal(xkey, (SEQ, BATCH, INPUT_DIM), jnp.float32)

    weights = jax.block_until_ready(weight_network_forward(params, rnn_output))

    ref = reference_forward(params, rnn_output)
    np.testing.assert_allclose(np.asarray(weights), np.asarray(ref),
                               rtol=1e-4, atol=1e-4)
    np.testing.assert_allclose(np.asarray(weights.sum(-1)),
                               np.ones((SEQ, BATCH), np.float32),
                               rtol=1e-5, atol=1e-5)
    assert weights.shape == (SEQ, BATCH, OUT)
    print("KERNEL_OK")
</pallas_src>

<mosaic_0001>
module attributes {stable_mosaic.version = 11 : i64} {
  func.func @weight_network_kernel(%arg0: i32, %arg1: memref<16x64xf32, #tpu.memory_space<vmem>>, %arg2: memref<64x128xf32, #tpu.memory_space<vmem>>, %arg3: memref<1x128xf32, #tpu.memory_space<vmem>>, %arg4: memref<1x128xf32, #tpu.memory_space<vmem>>, %arg5: memref<1x1xf32, #tpu.memory_space<vmem>>, %arg6: memref<16x2xf32, #tpu.memory_space<vmem>>) attributes {dimension_semantics = [#tpu.dimension_semantics<parallel>], iteration_bounds = array<i64: 2>, scalar_prefetch = 0 : i64, scratch_operands = 0 : i64, tpu.core_type = #tpu.core_type<tc>, window_params = [{transform_indices = @transform_0, window_bounds = array<i64: 16, 64>}, {pipeline_mode = #tpu.pipeline_mode<synchronous>, transform_indices = @transform_1, window_bounds = array<i64: 64, 128>}, {pipeline_mode = #tpu.pipeline_mode<synchronous>, transform_indices = @transform_2, window_bounds = array<i64: 1, 128>}, {pipeline_mode = #tpu.pipeline_mode<synchronous>, transform_indices = @transform_3, window_bounds = array<i64: 1, 128>}, {pipeline_mode = #tpu.pipeline_mode<synchronous>, transform_indices = @transform_4, window_bounds = array<i64: 1, 1>}, {transform_indices = @transform_5, window_bounds = array<i64: 16, 2>}]} {
    %c0 = arith.constant 0 : index
    %c0_0 = arith.constant 0 : index
    %0 = vector.load %arg1[%c0, %c0_0] : memref<16x64xf32, #tpu.memory_space<vmem>>, vector<16x64xf32>
    %c0_1 = arith.constant 0 : index
    %c0_2 = arith.constant 0 : index
    %1 = vector.load %arg2[%c0_1, %c0_2] : memref<64x128xf32, #tpu.memory_space<vmem>>, vector<64x128xf32>
    %cst = arith.constant dense<0.000000e+00> : vector<16x128xf32>
    %2 = tpu.matmul %0, %1, %cst {dimension_numbers = #tpu.dot_dimension_numbers<[1], [0], [0], [1], [0, 0, 1, 1], [], []>} : vector<16x64xf32>, vector<64x128xf32>, vector<16x128xf32> -> vector<16x128xf32>
    %c0_3 = arith.constant 0 : index
    %c0_4 = arith.constant 0 : index
    %3 = vector.load %arg3[%c0_3, %c0_4] : memref<1x128xf32, #tpu.memory_space<vmem>>, vector<1x128xf32>
    %4 = vector.broadcast %3 : vector<1x128xf32> to vector<16x128xf32>
    %5 = arith.addf %2, %4 : vector<16x128xf32>
    %cst_5 = arith.constant 0.000000e+00 : f32
    %6 = vector.broadcast %cst_5 : f32 to vector<16x128xf32>
    %7 = arith.maximumf %5, %6 : vector<16x128xf32>
    %c0_6 = arith.constant 0 : index
    %c0_7 = arith.constant 0 : index
    %8 = vector.load %arg4[%c0_6, %c0_7] : memref<1x128xf32, #tpu.memory_space<vmem>>, vector<1x128xf32>
    %9 = vector.broadcast %8 : vector<1x128xf32> to vector<16x128xf32>
    %10 = arith.mulf %7, %9 : vector<16x128xf32>
    %cst_8 = arith.constant dense<0.000000e+00> : vector<16xf32>
    %11 = vector.multi_reduction <add>, %10, %cst_8 [1] : vector<16x128xf32> to vector<16xf32>
    %12 = vector.shape_cast %11 : vector<16xf32> to vector<16x1xf32>
    %c0_9 = arith.constant 0 : index
    %c0_10 = arith.constant 0 : index
    %13 = vector.load %arg5[%c0_9, %c0_10] : memref<1x1xf32, #tpu.memory_space<vmem>>, vector<1x1xf32>
    %14 = vector.broadcast %13 : vector<1x1xf32> to vector<16x1xf32>
    %15 = arith.addf %12, %14 : vector<16x1xf32>
    %16 = tpu.iota {dimensions = array<i32: 1>} : vector<16x2xi32>
    %c0_i32 = arith.constant 0 : i32
    %17 = vector.broadcast %c0_i32 : i32 to vector<16x2xi32>
    %18 = arith.cmpi eq, %16, %17 : vector<16x2xi32>
    %cst_11 = arith.constant -1.000000e+00 : f32
    %cst_12 = arith.constant 1.000000e+00 : f32
    %19 = vector.broadcast %cst_11 : f32 to vector<16x2xf32>
    %20 = vector.broadcast %cst_12 : f32 to vector<16x2xf32>
    %21 = arith.select %18, %19, %20 : vector<16x2xi1>, vector<16x2xf32>
    %22 = vector.broadcast %15 : vector<16x1xf32> to vector<16x2xf32>
    %23 = arith.mulf %22, %21 : vector<16x2xf32>
    %24 = math.exp %23 : vector<16x2xf32>
    %cst_13 = arith.constant 1.000000e+00 : f32
    %25 = vector.broadcast %cst_13 : f32 to vector<16x2xf32>
    %26 = arith.addf %25, %24 : vector<16x2xf32>
    %cst_14 = arith.constant 1.000000e+00 : f32
    %27 = vector.broadcast %cst_14 : f32 to vector<16x2xf32>
    %28 = arith.divf %27, %26 : vector<16x2xf32>
    %c0_15 = arith.constant 0 : index
    %c0_16 = arith.constant 0 : index
    %29 = vector.load %arg6[%c0_15, %c0_16] : memref<16x2xf32, #tpu.memory_space<vmem>>, vector<16x2xf32>
    tpu.vector_store %arg6[%c0_15, %c0_16], %28 {strides = array<i32>} : memref<16x2xf32, #tpu.memory_space<vmem>>, vector<16x2xf32>,
    return
  }
  func.func @transform_0(%arg0: i32) -> (i32, i32) {
    %c0_i32 = arith.constant 0 : i32
    %c0_i32_0 = arith.constant 0 : i32
    return %arg0, %c0_i32 : i32, i32
  }
  func.func @transform_1(%arg0: i32) -> (i32, i32) {
    %c0_i32 = arith.constant 0 : i32
    %c0_i32_0 = arith.constant 0 : i32
    %c0_i32_1 = arith.constant 0 : i32
    return %c0_i32, %c0_i32_0 : i32, i32
  }
  func.func @transform_2(%arg0: i32) -> (i32, i32) {
    %c0_i32 = arith.constant 0 : i32
    %c0_i32_0 = arith.constant 0 : i32
    %c0_i32_1 = arith.constant 0 : i32
    return %c0_i32, %c0_i32_0 : i32, i32
  }
  func.func @transform_3(%arg0: i32) -> (i32, i32) {
    %c0_i32 = arith.constant 0 : i32
    %c0_i32_0 = arith.constant 0 : i32
    %c0_i32_1 = arith.constant 0 : i32
    return %c0_i32, %c0_i32_0 : i32, i32
  }
  func.func @transform_4(%arg0: i32) -> (i32, i32) {
    %c0_i32 = arith.constant 0 : i32
    %c0_i32_0 = arith.constant 0 : i32
    %c0_i32_1 = arith.constant 0 : i32
    return %c0_i32, %c0_i32_0 : i32, i32
  }
  func.func @transform_5(%arg0: i32) -> (i32, i32) {
    %c0_i32 = arith.constant 0 : i32
    %c0_i32_0 = arith.constant 0 : i32
    return %arg0, %c0_i32 : i32, i32
  }
}

</mosaic_0001>

<bundles_post_ra>
// kernel: tpu_custom_call.1
= control target key start
LH: loop header
LB: loop body
LE: loop exit
PB: predicated region body
PF: predicated region fallthrough
CT: control target
= control target key end

     0   :  { %s922_s0 = inlined_call_operand.hbm [shape: f32[32,64], index: 0, kind: input, shape index: {}]   ;;  %s923_s1 = inlined_call_operand.hbm [shape: f32[64,128], index: 1, kind: input, shape index: {}]   ;;  %s924_s2 = inlined_call_operand.vmem [shape: f32[1,128], index: 2, kind: input, shape index: {}]   ;;  %s925_s3 = inlined_call_operand.vmem [shape: f32[1,128], index: 3, kind: input, shape index: {}]   ;;  %s926_s4 = inlined_call_operand.<no memory space> [shape: f32[1,1], index: 4, kind: input, shape index: {}]   ;;  %s927_s5 = inlined_call_operand.vmem [shape: f32[32,2], index: 5, kind: output, shape index: {}]  }
   0x1   :  { %v10_v0 = vstv %s926_s4 }
   0x2   :  { %11 = vst [vmem:[#allocation2] sm:$0x1] %v10_v0 }
   0x3   :  { %12 = vsyncpa [#allocation4], 0 }
   0x4   :  { %14 = vsyncpa [#allocation4 + $0x1], 0 }
   0x5   :  { %15 = vsyncpa [#allocation6], 0  ;;  %s760_s20 = smov 0   ;;  %s762_s21 = smov 0  }
   0x6   :  { %s764_s22 = smov 0   ;;  %s766_s23 = smov 0  }
   0x7 LB: > { %s493_s4 = sadd.s32 4294967295, %s719_s23   ;;  %p41_p0 = scmp.ne.s32.totalorder %s711_s21, %s707_s20  ;;  %s719_s23 = sphi %s766_s23, %s944_s23   ;;  %s715_s22 = sphi %s764_s22, %s943_s22   ;;  %s711_s21 = sphi %s762_s21, %s942_s21   ;;  %s707_s20 = sphi %s760_s20, %s941_s20  }
   0x8   : > { %p782_p1 = scmp.eq.s32.totalorder %s493_s4, 0  ;;  %p495_p2 = scmp.ge.s32.totalorder %s719_s23, 1 }
   0x9   : > { %p162_p3 = scmp.lt.s32.totalorder %s719_s23, 3  ;;  %s721_s27 = smov [#allocation5]  }
   0xa   : > { %s932_s24 = scalar_select %p782_p1, 1, 0 }
   0xb   : > { %p790_p4 = por %p782_p1, %p41_p0  ;;  %p794_p5 = pnand %p495_p2, %p162_p3 }
   0xc   : > { %s174_s28 = sshll.u32 %s721_s27, 4  ;;  %s807_s30 = sadd.s32 1, %s719_s23   ;;  %s175_s28 = int_to_ptr.vmem [resolvable:$true] %s174_s28 }
   0xd   : > { %s933_s25 = scalar_select %p790_p4, 1, 0 }
   0xe   : > { %s934_s26 = scalar_select %p794_p5, 1, 0 }
   0xf   : > { %p565_p6 = pneg %p794_p5  ;;  %s28_s6 = sadd.s32 1, %s715_s22 }
  0x10   : > { %s25_s7 = ssub.s32 %s719_s23, %s807_s30  ;;  %s623_s10 = scalar_lea.hbm %s923_s1, 1024 }
  0x11   : > { %p802_p7 = pnand %p565_p6, %p782_p1  ;;  %p624_p8 = scmp.ne.s32.totalorder %s923_s1, %s623_s10 }
  0x12   : > { %p630_p12 = scmp.lt.u32.totalorder %s623_s10, %s923_s1 }
  0x13   : > { %p625_p9 = pneg %p802_p7 }
  0x15   : > { %p626_p10 = pnand %p625_p9, %p624_p8 }
  0x17   : > { %p627_p11 = pneg %p626_p10 }
  0x19   : > { %p632_p13 = pnand %p630_p12, %p627_p11 }
  0x1b   : > { %635 = shalt.err (!%p632_p13)
}
  0x1c   : > { %s636_s15 = scalar_lea.vmem %s175_s28, 1024  ;;  %p644_p6 = scmp.lt.s32.totalorder %s175_s28, %s175_s28 }
  0x1d   : > { %p637_p0 = scmp.ne.s32.totalorder %s175_s28, %s636_s15  ;;  %p645_p1 = scmp.lt.s32.totalorder %s636_s15, %s636_s15 }
  0x1f   : > { %p639_p2 = pnand %p637_p0, %p625_p9  ;;  %p646_p4 = por %p645_p1, %p644_p6 }
  0x21   : > { %p640_p3 = pneg %p639_p2 }
  0x23   : > { %p647_p5 = pnand %p646_p4, %p640_p3 }
  0x25   : > { %650 = shalt.err (!%p647_p5)
}
  0x26   : > { %s722_s16 = smov 128   ;;  %s723_s17 = smov 8  }
  0x27   : > { %568 = dma.hbm_to_vmem [thread:$0]  (!%p802_p7), %s923_s1, 1024, %s175_s28, [#allocation6], %s722_s16, %s722_s16, %s723_s17  }
  0x28   : > { %p26_p1 = scmp.eq.s32.totalorder %s25_s7, 0  ;;  %p35_p4 = scmp.ne.s32.totalorder %s715_s22, %s711_s21 }
  0x29   : > { %p36_p5 = scmp.eq.s32.totalorder %s719_s23, 0  ;;  %p574_p8 = scmp.lt.s32.totalorder %s719_s23, 2 }
  0x2a   : > { %s836_s20 = scalar_select %p26_p1, %s715_s22, %s28_s6  }
  0x2b   : > { %p37_p9 = por %p36_p5, %p35_p4  ;;  %s197_s27 = sand.u32 1, %s715_s22  }
  0x2c   : > { %s498_s8 = sshll.u32 %s197_s27, 4  ;;  %s513_s9 = sshll.u32 %s719_s23, 8 }
  0x2d   : > { %s843_s29 = scalar_lea.hbm %s922_s0, %s513_s9  ;;  %s201_s28 = scalar_lea.vmem [#allocation3], %s498_s8 }
  0x2e   : > { %s208_s7 = sshll.u32 %s201_s28, 4  ;;  %p847_p7 = pnand %p574_p8, %p37_p9  ;;  %s845_s7 = int_to_ptr.vmem [resolvable:$true] %s208_s7 }
  0x2f   : > { %s851_s12 = scalar_lea.sflag [#allocation4], %s197_s27  ;;  %s651_s13 = scalar_lea.hbm %s843_s29, 256 }
  0x30   : > { %p652_p10 = scmp.ne.s32.totalorder %s843_s29, %s651_s13  ;;  %p653_p11 = pneg %p847_p7 }
  0x31   : > { %s656_s18 = scalar_lea.hbm %s922_s0, 512  ;;  %p657_p0 = scmp.lt.u32.totalorder %s843_s29, %s922_s0 }
  0x32   : > { %p654_p12 = pnand %p653_p11, %p652_p10  ;;  %p658_p2 = scmp.lt.u32.totalorder %s656_s18, %s651_s13 }
  0x33   : > { %p660_p6 = scmp.lt.u32.totalorder %s651_s13, %s843_s29 }
  0x34   : > { %p655_p13 = pneg %p654_p12  ;;  %p659_p3 = por %p658_p2, %p657_p0 }
  0x36   : > { %p661_p1 = por %p660_p6, %p659_p3 }
  0x38   : > { %p662_p4 = pnand %p661_p1, %p655_p13 }
  0x3a   : > { %665 = shalt.err (!%p662_p4)
}
  0x3b   : > { %s666_s27 = scalar_lea.vmem %s845_s7, 256  ;;  %s724_s9 = smov [#allocation3]  }
  0x3c   : > { %p667_p5 = scmp.ne.s32.totalorder %s845_s7, %s666_s27  ;;  %s671_s10 = sshll.u32 %s724_s9, 4  ;;  %s672_s10 = int_to_ptr.vmem [resolvable:$false] %s671_s10 }
  0x3d   : > { %s673_s11 = scalar_lea.vmem %s672_s10, 512  ;;  %p674_p10 = scmp.lt.s32.totalorder %s845_s7, %s672_s10 }
  0x3e   : > { %p669_p8 = pnand %p667_p5, %p653_p11  ;;  %p675_p12 = scmp.lt.s32.totalorder %s673_s11, %s666_s27 }
  0x40   : > { %p670_p9 = pneg %p669_p8  ;;  %p676_p0 = por %p675_p12, %p674_p10 }
  0x42   : > { %p677_p2 = pnand %p676_p0, %p670_p9 }
  0x44   : > { %680 = shalt.err (!%p677_p2)
}
  0x45   : > { %572 = dma.hbm_to_vmem [thread:$0]  (!%p847_p7), %s843_s29, 256, %s845_s7, %s851_s12, %s722_s16, %s722_s16, %s723_s17  }
  0x46   : > { %p937_p11 = scmp.ne.s32.totalorder %s934_s26, 0 }
  0x47   : > { %s222_s28 = sand.u32 (!%p937_p11), 1, %s711_s21   ;;  %p938_p13 = scmp.ne.s32.totalorder (!%p937_p11), %s933_s25, 0 }
  0x48   : > { %220 = sbr.rel (%p937_p11) target bundleno = 626 (0x272), region = 40  ;;  %s885_s13 = sshll.u32 (!%p937_p11), %s222_s28, 4 }
  0x49   : > { %s223_s14 = scalar_lea.sflag (!%p937_p11), [#allocation4], %s222_s28  ;;  %s226_s15 = scalar_lea.vmem (!%p937_p11), [#allocation3], %s885_s13 }
  0x4f   : > { %698 = dma.done.wait (%p938_p13), %s223_s14, 256  }
  0x50   : > { %700 = vsyncadd (%p938_p13), %s223_s14, 4294967040  ;;  %p939_p3 = scmp.ne.s32.totalorder %s932_s24, 0 }
  0x52   : > { %702 = dma.done.wait (%p939_p3), [#allocation6], 1024  }
  0x53   : > { %704 = vsyncadd (%p939_p3), [#allocation6], 4294966272  ;;  %v266_v1 = vld [vmem:[#allocation5] sm:$0xff]  ;;  %v267_v2 = vld [vmem:[#allocation5 + $0x8] sm:$0xff]  ;;  %vm281_vm0 = vcmask 523264   ;;  %v725_v25 = vmov 0   ;;  %v387_v31 = vlaneseq }
  0x54   : > { %v268_v3 = vld [vmem:[#allocation5 + $0x10] sm:$0xff]  ;;  %v543_v4 = vpack.c.bf16 %v267_v2, %v266_v1  ;;  %v269_v5 = vld [vmem:[#allocation5 + $0x18] sm:$0xff]  ;;  %v270_v7 = vld [vmem:[#allocation5 + $0x20] sm:$0xff]  ;;  %613 = vset.pattern.permute.xlu1 %v725_v25  ;;  %614 = vset.pattern.permute.xlu0 %v725_v25  ;;  %v726_v33 = vmov 1.0   ;;  %s504_s17 = sshll.u32 %s493_s4, 1  ;;  %vm413_vm2 = vcmask 15360  }
  0x55   : > { %v547_v6 = vpack.c.bf16 %v269_v5, %v268_v3  ;;  %v271_v8 = vld [vmem:[#allocation5 + $0x28] sm:$0xff]  ;;  %v264_v9 = vld [vmem:[%s226_s15] sm:$0xff]  ;;  %v273_v12 = vld [vmem:[#allocation5 + $0x38] sm:$0xff]  ;;  %v388_v32 = vand.u32 127, %v387_v31  ;;  %p259_p7 = scmp.lt.s32.totalorder %s504_s17, 3 }
  0x56   : > { %544 = vmatprep.subr.bf16.mxu0 %v543_v4  ;;  %540 = vmatprep.mubr.msk.f32.mxu0 %vm281_vm0, %v264_v9  ;;  %v551_v10 = vpack.c.bf16 %v271_v8, %v270_v7  ;;  %v272_v11 = vld [vmem:[#allocation5 + $0x30] sm:$0xff]  ;;  %v265_v14 = vld [vmem:[%s226_s15 + $0x8] sm:$0xff] }
  0x57   : > { %546 = vmatpush3.bf16.msra.mxu0 %v543_v4  ;;  %v555_v13 = vpack.c.bf16 %v273_v12, %v272_v11  ;;  %v506_v15 = vld [vmem:[%s924_s2] ss:$0 sm:$0xff]  ;;  %vm389_vm1 = vcmp.eq.s32.totalorder %v388_v32, 0  ;;  %s946_s17 = smov (!%p259_p7, %s504_s17), 3 }
  0x58   : > { %548 = vmatprep.subr.bf16.mxu0 %v547_v6  ;;  %v509_v20 = vld [vmem:[%s925_s3] ss:$0 sm:$0xff]  ;;  %v390_v34 = vsel %vm389_vm1, -1.0, %v726_v33  ;;  %s505_s29 = sshll.u32 %s946_s17, 3 }
  0x59   : > { %v510_v26 = vld [vmem:[#allocation2] ss:$0 sm:$0xff]  ;;  %s262_s12 = scalar_lea.vmem %s927_s5, %s505_s29 }
  0x5b   : > { %550 = vmatpush3.bf16.msra.mxu0 %v547_v6 }
  0x5c   : > { %552 = vmatprep.subr.bf16.mxu0 %v551_v10 }
  0x5f   : > { %554 = vmatpush3.bf16.msra.mxu0 %v551_v10 }
  0x60   : > { %556 = vmatprep.subr.bf16.mxu0 %v555_v13 }
  0x63   : > { %558 = vmatpush3.bf16.msra.mxu0 %v555_v13 }
  0x66   : > { %541 = vmatmul.mubr.msk.f32.vlgmr.msra.gmra.mrb[0].mxu0 %vm281_vm0, %v265_v14 }
 0x139   : > { %v542_v16 = vpop.f32.mrb[0].mxu0 }
 0x13a   : > { %v354_v17 = vpop.f32.mrb[1].mxu0  ;;  %v360_v18 = vadd.f32 %v542_v16, %v506_v15 }
 0x13b   : > { %v355_v19 = vadd.f32 %v506_v15, %v354_v17 }
 0x13c   : > { %v364_v22 = vmax.f32 %v360_v18, 0.0 }
 0x13d   : > { %v363_v21 = vmax.f32 %v355_v19, 0.0 }
 0x13e   : > { %v373_v24 = vmul.f32 %v509_v20, %v364_v22 }
 0x13f   : > { %v372_v23 = vmul.f32 %v509_v20, %v363_v21 }
 0x141   : > { %374 = vadd.xlane.f32.xlu0 %v372_v23 }
 0x145   : > { %376 = vadd.xlane.f32.xlu0 %v373_v24 }
 0x1ce   : > { %v375_v27 = vpop.xlane.xlu0 %374 }
 0x1cf   : > { %v385_v28 = vadd.f32 %v510_v26, %v375_v27 }
 0x1d1   : > { %393 = vperm.xlu1 %613, %v385_v28  }
 0x1d2   : > { %v377_v29 = vpop.xlane.xlu0 %376 }
 0x1d3   : > { %v386_v30 = vadd.f32 %v510_v26, %v377_v29 }
 0x1d5   : > { %398 = vperm.xlu1 %613, %v386_v30  }
 0x250   : > { %v394_v35 = vpop.permute.xlu1 %393 }
 0x251   : > { %v401_v36 = vmul.f32 %v394_v35, %v390_v34 }
 0x253   : > { %v403_v37 = vmul.f32 1.442695, %v401_v36 }
 0x254   : > { %v399_v38 = vpop.permute.xlu1 %398 }
 0x255   : > { %615 = vpow2.f32 %v403_v37  ;;  %v402_v39 = vmul.f32 %v399_v38, %v390_v34 }
 0x257   : > { %v405_v40 = vmul.f32 1.442695, %v402_v39 }
 0x259   : > { %617 = vpow2.f32 %v405_v40 }
 0x25f   : > { %v616_v41 = vpop.eup %615 }
 0x260   : > { %v407_v42 = vadd.f32 1.0, %v616_v41 }
 0x262   : > { %619 = vrcp.f32 %v407_v42 }
 0x263   : > { %v618_v43 = vpop.eup %617 }
 0x264   : > { %v408_v44 = vadd.f32 1.0, %v618_v43 }
 0x266   : > { %621 = vrcp.f32 %v408_v44 }
 0x26c   : > { %v620_v45 = vpop.eup %619 }
 0x26d   : > { %414 = vst.msk [vmem:[%s262_s12] sm:$0xff] %vm413_vm2, %v620_v45 }
 0x270   : > { %v622_v46 = vpop.eup %621 }
 0x271   : > { %415 = vst.msk [vmem:[%s262_s12 + $0x8] sm:$0xff] %vm413_vm2, %v622_v46 }
 0x272 PF: > { %s940_s23 = smov %s836_s20  ;;  %p18_p6 = scmp.ge.s32.totalorder %s807_s30, 4  }
 0x273   : > { %s941_s20 = smov %s711_s21  ;;  %s942_s21 = smov %s715_s22 }
 0x274   : > { %s943_s22 = smov %s940_s23  ;;  %s944_s23 = smov %s807_s30 }
 0x275   :  { %20 = sbr.rel (!%p18_p6) target bundleno = 7 (0x7), region = 84 }
 0x27c   :  { %438 = vsyncpa [#allocation4], 1 }
 0x27d   :  { %440 = vsyncpa [#allocation4 + $0x1], 1 }
 0x27e   :  { %441 = vsyncpa [#allocation6], 1 }

</bundles_post_ra>
